<compile_context>
chip_gen: v7x
topology: tpu7x:2x2x1
jax: 0.10.0
libtpu: 0.0.40
codegen_flags: <defaults>
</compile_context>

<pallas_src>
import functools

import jax
import jax.numpy as jnp
from jax import lax
from jax.experimental import pallas as pl
from jax.experimental.pallas import tpu as pltpu

EPS = 1e-5


def simple_nn_kernel(x_ref, slab_ref, w2_ref, o_ref, *, n_valid):
    inv_n = 1.0 / n_valid
    n_pad = x_ref.shape[-1]

    x = x_ref[...]                                   # (1, Npad); padded columns are exact zeros

    # Per-feature params packed as columns of one (64, 8) f32 slab.
    w1 = slab_ref[:, 0:1]                            # (64, 1)  fc1 weight (rank-1)
    g1 = slab_ref[:, 1:2]                            # (64, 1)  bn1 gamma
    be1 = slab_ref[:, 2:3]                           # (64, 1)  bn1 beta
    g2 = slab_ref[0:32, 3:4]                         # (32, 1)  bn2 gamma
    be2 = slab_ref[0:32, 4:5]                        # (32, 1)  bn2 beta
    w3 = slab_ref[0:32, 5:6]                         # (32, 1)  fc3 weight
    b3 = slab_ref[0:1, 6:7]                          # (1, 1)   fc3 bias

    # ---- fc1 + bn1 + relu, batch stats computed algebraically from x (VPU only) ----
    # h1_pre[f, n] = w1[f] * x[n] (+ b1[f], which cancels under training-mode BN), so
    # mu1 = mean(x) * w1 and var1 = var(x) * w1^2 -- a scalar reduction instead of (64,N) passes.
    xm = jnp.sum(x, axis=-1, keepdims=True) * inv_n                      # (1, 1)
    xv = jnp.sum(x * x, axis=-1, keepdims=True) * inv_n - xm * xm        # (1, 1)
    xv = jnp.maximum(xv, 0.0)                                            # cancellation guard
    s1 = g1 * lax.rsqrt(w1 * w1 * xv + EPS)                              # (64, 1) fused scale
    ws = w1 * s1                                                         # (64, 1)
    h1 = jnp.maximum(x * ws + (be1 - xm * ws), 0.0)                      # (64, Npad)

    # ---- fc2 on the MXU: bf16 operands, f32 accumulation (b2 cancels in bn2) ----
    h2 = jnp.dot(w2_ref[...], h1.astype(jnp.bfloat16),
                 preferred_element_type=jnp.float32)                     # (32, Npad)

    # ---- bn2 (training-mode batch stats over the valid columns only) + relu ----
    mask = (lax.broadcasted_iota(jnp.int32, (1, n_pad), 1)
            < n_valid).astype(jnp.float32)                               # (1, Npad)
    hm = h2 * mask                                                       # zero out padded cols
    mu2 = jnp.sum(hm, axis=-1, keepdims=True) * inv_n                    # (32, 1)
    m2 = jnp.sum(hm * h2, axis=-1, keepdims=True) * inv_n                # (32, 1) = E[h2^2]
    var2 = jnp.maximum(m2 - mu2 * mu2, 0.0)
    s2 = g2 * lax.rsqrt(var2 + EPS)                                      # (32, 1)
    h2 = jnp.maximum(h2 * s2 + (be2 - mu2 * s2), 0.0)                    # (32, Npad)

    # ---- fc3 as broadcast-mul + sublane reduce (no 1-wide matmul), lane-dense store ----
    o_ref[...] = jnp.sum(h2 * w3, axis=0, keepdims=True) + b3            # (1, Npad)


def pack_params(p):
    """Pack the tiny per-feature params into one column slab + a bf16 fc2 weight."""
    slab = jnp.zeros((64, 8), jnp.float32)
    slab = slab.at[:, 0].set(p["w1"][0, :])        # fc1 weight column
    slab = slab.at[:, 1].set(p["g1"][0, :])        # bn1 gamma
    slab = slab.at[:, 2].set(p["be1"][0, :])       # bn1 beta
    slab = slab.at[:32, 3].set(p["g2"][0, :])      # bn2 gamma
    slab = slab.at[:32, 4].set(p["be2"][0, :])     # bn2 beta
    slab = slab.at[:32, 5].set(p["w3"][:, 0])      # fc3 weight
    slab = slab.at[0, 6].set(p["b3"][0, 0])        # fc3 bias
    w2_t = p["w2"].T.astype(jnp.bfloat16)          # (32, 64), MXU-native layout/dtype
    return slab, w2_t


def simple_nn_forward(x, packed):
    """x: (N, 1) float32.  packed = (slab, w2_bf16) from pack_params.  Returns (N, 1)."""
    slab, w2_t = packed
    n = x.shape[0]
    n_pad = ((n + 127) // 128) * 128
    x_t = jnp.pad(x.reshape(1, n), ((0, 0), (0, n_pad - n)))             # (1, Npad), lane-dense

    vmem = pl.BlockSpec(memory_space=pltpu.MemorySpace.VMEM)
    out = pl.pallas_call(
        functools.partial(simple_nn_kernel, n_valid=n),
        out_shape=jax.ShapeDtypeStruct((1, n_pad), jnp.float32),
        in_specs=[vmem, vmem, vmem],
        out_specs=vmem,
        compiler_params=pltpu.CompilerParams(vmem_limit_bytes=32 * 1024 * 1024),
    )(x_t, slab, w2_t)
    return out[0, :n].reshape(n, 1)


def init_params(key):
    """Deterministic synthetic parameters matching SimpleNN's shapes.

    Linear weights stored transposed: (in_features, out_features). b1/b2 are generated
    (and used by the reference) to demonstrate they cancel under training-mode BatchNorm;
    the kernel does not consume them.
    """
    ks = jax.random.split(key, 10)
    return {
        # fc1: Linear(1, 64)
        "w1": jax.random.normal(ks[0], (1, 64), jnp.float32) * 0.5,
        "b1": jax.random.normal(ks[1], (1, 64), jnp.float32) * 0.1,
        # bn1: BatchNorm1d(64) affine
        "g1": 1.0 + 0.1 * jax.random.normal(ks[2], (1, 64), jnp.float32),
        "be1": 0.1 * jax.random.normal(ks[3], (1, 64), jnp.float32),
        # fc2: Linear(64, 32)
        "w2": jax.random.normal(ks[4], (64, 32), jnp.float32) * (1.0 / 8.0),
        "b2": jax.random.normal(ks[5], (1, 32), jnp.float32) * 0.1,
        # bn2: BatchNorm1d(32) affine
        "g2": 1.0 + 0.1 * jax.random.normal(ks[6], (1, 32), jnp.float32),
        "be2": 0.1 * jax.random.normal(ks[7], (1, 32), jnp.float32),
        # fc3: Linear(32, 1)
        "w3": jax.random.normal(ks[8], (32, 1), jnp.float32) * (1.0 / 5.6568),
        "b3": jax.random.normal(ks[9], (1, 1), jnp.float32) * 0.1,
    }


def reference_forward(x, p):
    """Pure-JAX f32 reference with full PyTorch semantics (including the inert fc1/fc2 biases)."""
    h = x @ p["w1"] + p["b1"]
    mu = h.mean(0, keepdims=True)
    var = ((h - mu) ** 2).mean(0, keepdims=True)
    h = jnp.maximum((h - mu) / jnp.sqrt(var + EPS) * p["g1"] + p["be1"], 0.0)
    h = h @ p["w2"] + p["b2"]
    mu = h.mean(0, keepdims=True)
    var = ((h - mu) ** 2).mean(0, keepdims=True)
    h = jnp.maximum((h - mu) / jnp.sqrt(var + EPS) * p["g2"] + p["be2"], 0.0)
    return h @ p["w3"] + p["b3"]


if __name__ == "__main__":
    key = jax.random.PRNGKey(0)
    k_x, k_p = jax.random.split(key)

    N = 8  # small batch; training-mode BatchNorm needs N > 1
    x = jax.random.normal(k_x, (N, 1), jnp.float32) * 10.0  # scalar "people count" feature
    params = init_params(k_p)
    packed = pack_params(params)

    out = simple_nn_forward(x, packed)
    out = jax.block_until_ready(out)

    ref = reference_forward(x, params)
    assert out.shape == (N, 1)
    # Tolerance covers the bf16 fc2 matmul (f32 accumulation); observed error is ~1e-3.
    assert jnp.allclose(out, ref, atol=2e-2, rtol=2e-2), (out, ref)

    print("KERNEL_OK")
</pallas_src>

<mosaic_0001>
module attributes {stable_mosaic.version = 11 : i64} {
  func.func @simple_nn_kernel(%arg0: memref<1x128xf32, #tpu.memory_space<vmem>>, %arg1: memref<64x8xf32, #tpu.memory_space<vmem>>, %arg2: memref<32x64xbf16, #tpu.memory_space<vmem>>, %arg3: memref<1x128xf32, #tpu.memory_space<vmem>>) attributes {dimension_semantics = [], scalar_prefetch = 0 : i64, scratch_operands = 0 : i64, tpu.core_type = #tpu.core_type<tc>} {
    %c0 = arith.constant 0 : index
    %c0_0 = arith.constant 0 : index
    %0 = vector.load %arg0[%c0, %c0_0] : memref<1x128xf32, #tpu.memory_space<vmem>>, vector<1x128xf32>
    %c0_1 = arith.constant 0 : index
    %c0_2 = arith.constant 0 : index
    %1 = vector.load %arg1[%c0_1, %c0_2] : memref<64x8xf32, #tpu.memory_space<vmem>>, vector<64x1xf32>
    %c0_3 = arith.constant 0 : index
    %c1 = arith.constant 1 : index
    %2 = vector.load %arg1[%c0_3, %c1] : memref<64x8xf32, #tpu.memory_space<vmem>>, vector<64x1xf32>
    %c0_4 = arith.constant 0 : index
    %c2 = arith.constant 2 : index
    %3 = vector.load %arg1[%c0_4, %c2] : memref<64x8xf32, #tpu.memory_space<vmem>>, vector<64x1xf32>
    %c0_5 = arith.constant 0 : index
    %c3 = arith.constant 3 : index
    %4 = vector.load %arg1[%c0_5, %c3] : memref<64x8xf32, #tpu.memory_space<vmem>>, vector<32x1xf32>
    %c0_6 = arith.constant 0 : index
    %c4 = arith.constant 4 : index
    %5 = vector.load %arg1[%c0_6, %c4] : memref<64x8xf32, #tpu.memory_space<vmem>>, vector<32x1xf32>
    %c0_7 = arith.constant 0 : index
    %c5 = arith.constant 5 : index
    %6 = vector.load %arg1[%c0_7, %c5] : memref<64x8xf32, #tpu.memory_space<vmem>>, vector<32x1xf32>
    %c0_8 = arith.constant 0 : index
    %c6 = arith.constant 6 : index
    %7 = vector.load %arg1[%c0_8, %c6] : memref<64x8xf32, #tpu.memory_space<vmem>>, vector<1x1xf32>
    %cst = arith.constant dense<0.000000e+00> : vector<1xf32>
    %8 = vector.multi_reduction <add>, %0, %cst [1] : vector<1x128xf32> to vector<1xf32>
    %9 = vector.shape_cast %8 : vector<1xf32> to vector<1x1xf32>
    %cst_9 = arith.constant 1.250000e-01 : f32
    %10 = vector.broadcast %cst_9 : f32 to vector<1x1xf32>
    %11 = arith.mulf %9, %10 : vector<1x1xf32>
    %12 = arith.mulf %0, %0 : vector<1x128xf32>
    %cst_10 = arith.constant dense<0.000000e+00> : vector<1xf32>
    %13 = vector.multi_reduction <add>, %12, %cst_10 [1] : vector<1x128xf32> to vector<1xf32>
    %14 = vector.shape_cast %13 : vector<1xf32> to vector<1x1xf32>
    %cst_11 = arith.constant 1.250000e-01 : f32
    %15 = vector.broadcast %cst_11 : f32 to vector<1x1xf32>
    %16 = arith.mulf %14, %15 : vector<1x1xf32>
    %17 = arith.mulf %11, %11 : vector<1x1xf32>
    %18 = arith.subf %16, %17 : vector<1x1xf32>
    %cst_12 = arith.constant 0.000000e+00 : f32
    %19 = vector.broadcast %cst_12 : f32 to vector<1x1xf32>
    %20 = arith.maximumf %18, %19 : vector<1x1xf32>
    %21 = arith.mulf %1, %1 : vector<64x1xf32>
    %22 = vector.broadcast %20 : vector<1x1xf32> to vector<64x1xf32>
    %23 = arith.mulf %21, %22 : vector<64x1xf32>
    %cst_13 = arith.constant 9.99999974E-6 : f32
    %24 = vector.broadcast %cst_13 : f32 to vector<64x1xf32>
    %25 = arith.addf %23, %24 : vector<64x1xf32>
    %26 = math.rsqrt %25 : vector<64x1xf32>
    %27 = arith.mulf %2, %26 : vector<64x1xf32>
    %28 = arith.mulf %1, %27 : vector<64x1xf32>
    %29 = vector.broadcast %0 : vector<1x128xf32> to vector<64x128xf32>
    %30 = vector.broadcast %28 : vector<64x1xf32> to vector<64x128xf32>
    %31 = arith.mulf %29, %30 : vector<64x128xf32>
    %32 = vector.broadcast %11 : vector<1x1xf32> to vector<64x1xf32>
    %33 = arith.mulf %32, %28 : vector<64x1xf32>
    %34 = arith.subf %3, %33 : vector<64x1xf32>
    %35 = vector.broadcast %34 : vector<64x1xf32> to vector<64x128xf32>
    %36 = arith.addf %31, %35 : vector<64x128xf32>
    %cst_14 = arith.constant 0.000000e+00 : f32
    %37 = vector.broadcast %cst_14 : f32 to vector<64x128xf32>
    %38 = arith.maximumf %36, %37 : vector<64x128xf32>
    %c0_15 = arith.constant 0 : index
    %c0_16 = arith.constant 0 : index
    %39 = vector.load %arg2[%c0_15, %c0_16] : memref<32x64xbf16, #tpu.memory_space<vmem>>, vector<32x64xbf16>
    %40 = arith.truncf %38 : vector<64x128xf32> to vector<64x128xbf16>
    %cst_17 = arith.constant dense<0.000000e+00> : vector<32x128xf32>
    %41 = tpu.matmul %39, %40, %cst_17 {dimension_numbers = #tpu.dot_dimension_numbers<[1], [0], [0], [1], [0, 0, 1, 1], [], []>} : vector<32x64xbf16>, vector<64x128xbf16>, vector<32x128xf32> -> vector<32x128xf32>
    %42 = tpu.iota {dimensions = array<i32: 1>} : vector<1x128xi32>
    %c8_i32 = arith.constant 8 : i32
    %43 = vector.broadcast %c8_i32 : i32 to vector<1x128xi32>
    %44 = arith.cmpi slt, %42, %43 : vector<1x128xi32>
    %45 = arith.extui %44 : vector<1x128xi1> to vector<1x128xi32>
    %46 = arith.sitofp %45 : vector<1x128xi32> to vector<1x128xf32>
    %47 = vector.broadcast %46 : vector<1x128xf32> to vector<32x128xf32>
    %48 = arith.mulf %41, %47 : vector<32x128xf32>
    %cst_18 = arith.constant dense<0.000000e+00> : vector<32xf32>
    %49 = vector.multi_reduction <add>, %48, %cst_18 [1] : vector<32x128xf32> to vector<32xf32>
    %50 = vector.shape_cast %49 : vector<32xf32> to vector<32x1xf32>
    %cst_19 = arith.constant 1.250000e-01 : f32
    %51 = vector.broadcast %cst_19 : f32 to vector<32x1xf32>
    %52 = arith.mulf %50, %51 : vector<32x1xf32>
    %53 = arith.mulf %48, %41 : vector<32x128xf32>
    %cst_20 = arith.constant dense<0.000000e+00> : vector<32xf32>
    %54 = vector.multi_reduction <add>, %53, %cst_20 [1] : vector<32x128xf32> to vector<32xf32>
    %55 = vector.shape_cast %54 : vector<32xf32> to vector<32x1xf32>
    %cst_21 = arith.constant 1.250000e-01 : f32
    %56 = vector.broadcast %cst_21 : f32 to vector<32x1xf32>
    %57 = arith.mulf %55, %56 : vector<32x1xf32>
    %58 = arith.mulf %52, %52 : vector<32x1xf32>
    %59 = arith.subf %57, %58 : vector<32x1xf32>
    %cst_22 = arith.constant 0.000000e+00 : f32
    %60 = vector.broadcast %cst_22 : f32 to vector<32x1xf32>
    %61 = arith.maximumf %59, %60 : vector<32x1xf32>
    %cst_23 = arith.constant 9.99999974E-6 : f32
    %62 = vector.broadcast %cst_23 : f32 to vector<32x1xf32>
    %63 = arith.addf %61, %62 : vector<32x1xf32>
    %64 = math.rsqrt %63 : vector<32x1xf32>
    %65 = arith.mulf %4, %64 : vector<32x1xf32>
    %66 = vector.broadcast %65 : vector<32x1xf32> to vector<32x128xf32>
    %67 = arith.mulf %41, %66 : vector<32x128xf32>
    %68 = arith.mulf %52, %65 : vector<32x1xf32>
    %69 = arith.subf %5, %68 : vector<32x1xf32>
    %70 = vector.broadcast %69 : vector<32x1xf32> to vector<32x128xf32>
    %71 = arith.addf %67, %70 : vector<32x128xf32>
    %cst_24 = arith.constant 0.000000e+00 : f32
    %72 = vector.broadcast %cst_24 : f32 to vector<32x128xf32>
    %73 = arith.maximumf %71, %72 : vector<32x128xf32>
    %74 = vector.broadcast %6 : vector<32x1xf32> to vector<32x128xf32>
    %75 = arith.mulf %73, %74 : vector<32x128xf32>
    %cst_25 = arith.constant dense<0.000000e+00> : vector<128xf32>
    %76 = vector.multi_reduction <add>, %75, %cst_25 [0] : vector<32x128xf32> to vector<128xf32>
    %77 = vector.shape_cast %76 : vector<128xf32> to vector<1x128xf32>
    %78 = vector.broadcast %7 : vector<1x1xf32> to vector<1x128xf32>
    %79 = arith.addf %77, %78 : vector<1x128xf32>
    %c0_26 = arith.constant 0 : index
    %c0_27 = arith.constant 0 : index
    %80 = vector.load %arg3[%c0_26, %c0_27] : memref<1x128xf32, #tpu.memory_space<vmem>>, vector<1x128xf32>
    tpu.vector_store %arg3[%c0_26, %c0_27], %79 {strides = array<i32>} : memref<1x128xf32, #tpu.memory_space<vmem>>, vector<1x128xf32>,
    return
  }
}

</mosaic_0001>

<bundles_post_ra>
// kernel: tpu_custom_call.1
= control target key start
LH: loop header
LB: loop body
LE: loop exit
PB: predicated region body
PF: predicated region fallthrough
CT: control target
= control target key end

     0   :  { %vm26_vm0 = vcmask 1040384   ;;  %s881_s0 = inlined_call_operand.vmem [shape: f32[1,128], index: 0, kind: input, shape index: {}]   ;;  %s882_s1 = inlined_call_operand.vmem [shape: f32[64,8], index: 1, kind: input, shape index: {}]   ;;  %s883_s2 = inlined_call_operand.vmem [shape: bf16[32,64], index: 2, kind: input, shape index: {}]   ;;  %s884_s3 = inlined_call_operand.hbm [shape: f32[1,128], index: 3, kind: output, shape index: {}]  }
   0x1   :  { %v716_v0 = vld [vmem:[%s881_s0] sm:$0x1] }
   0x2   :  { %v27_v1 = vsel %vm26_vm0, %v716_v0, 0.0  ;;  %v31_v2 = vmul.f32 %v716_v0, %v716_v0 }
   0x3   :  { %28 = vadd.xlane.f32.xlu0 %v27_v1 }
   0x4   :  { %8 = vsyncpa [#allocation3], 0  ;;  %v32_v3 = vsel %vm26_vm0, %v31_v2, 0.0  ;;  %v47_v5 = vlaneseq  ;;  %v729_v11 = vld [vmem:[%s882_s1 + $0x10] sm:$0xff]  ;;  %v734_v12 = vld [vmem:[%s882_s1] sm:$0xff]  ;;  %s682_s29 = smov 1  }
   0x5   :  { %v739_v14 = vld [vmem:[%s882_s1 + $0x8] sm:$0xff]  ;;  %v41_v17 = vmul.f32 %v729_v11, %v729_v11  ;;  %v39_v18 = vmul.f32 %v734_v12, %v734_v12  ;;  %v753_v21 = vld [vmem:[%s882_s1 + $0x18] sm:$0xff]  ;;  %v760_v28 = vld [vmem:[%s882_s1 + $0x20] sm:$0xff]  ;;  %s683_s30 = smov 127   ;;  %s685_s4 = smov 2   ;;  %vm335_vm1 = vcmask 523264  }
   0x6   :  { %v48_v8 = vshrl.u32 %v47_v5, 7  ;;  %v40_v19 = vmul.f32 %v739_v14, %v739_v14  ;;  %v42_v25 = vmul.f32 %v753_v21, %v753_v21  ;;  %v43_v31 = vmul.f32 %v760_v28, %v760_v28  ;;  %v767_v32 = vld [vmem:[%s882_s1 + $0x28] sm:$0xff]  ;;  %v774_v36 = vld [vmem:[%s882_s1 + $0x30] sm:$0xff]  ;;  %v781_v41 = vld [vmem:[%s882_s1 + $0x38] sm:$0xff] }
   0x7   :  { %33 = vadd.xlane.f32.xlu0 %v32_v3  ;;  %v44_v35 = vmul.f32 %v767_v32, %v767_v32  ;;  %v45_v39 = vmul.f32 %v774_v36, %v774_v36  ;;  %v46_v45 = vmul.f32 %v781_v41, %v781_v41 }
   0x8   :  { %v741_v15 = vsub.s32 0, %v48_v8 }
  0x90   :  { %v29_v4 = vpop.xlane.xlu0 %28 }
  0x91   :  { %v721_v6 = vmul.f32 0.125, %v29_v4  ;;  %v684_v4 = vmov 0  }
  0x92   :  { %616 = vset.pattern.permute.xlu1 %v684_v4  ;;  %617 = vset.pattern.permute.xlu0 %v684_v4 }
  0x93   :  { %v36_v9 = vmul.f32 %v721_v6, %v721_v6 }
  0x94   :  { %v34_v7 = vpop.xlane.xlu0 %33 }
  0x95   :  { %v35_v10 = vmul.f32 0.125, %v34_v7 }
  0x97   :  { %v37_v13 = vsub.f32 %v35_v10, %v36_v9 }
  0x99   :  { %v38_v16 = vmax.f32 %v37_v13, 0.0 }
  0x9b   :  { %v50_v20 = vrot.slane %v38_v16, %v741_v15  ;;  %v212_v16 = vrot.slane %v721_v6, %v741_v15 }
  0x9d   :  { %v53_v22 = vmul.f32 %v50_v20, %v41_v17  ;;  %v51_v23 = vmul.f32 %v50_v20, %v39_v18  ;;  %v52_v24 = vmul.f32 %v50_v20, %v40_v19  ;;  %v54_v30 = vmul.f32 %v50_v20, %v42_v25 }
  0x9e   :  { %v55_v34 = vmul.f32 %v50_v20, %v43_v31  ;;  %v56_v38 = vmul.f32 %v50_v20, %v44_v35  ;;  %v57_v44 = vmul.f32 %v50_v20, %v45_v39  ;;  %v58_v48 = vmul.f32 %v50_v20, %v46_v45 }
  0x9f   :  { %v61_v26 = vadd.f32 1e-05, %v53_v22  ;;  %v59_v27 = vadd.f32 1e-05, %v51_v23  ;;  %v60_v29 = vadd.f32 1e-05, %v52_v24 }
  0xa0   :  { %v62_v33 = vadd.f32 1e-05, %v54_v30  ;;  %v63_v37 = vadd.f32 1e-05, %v55_v34  ;;  %v64_v43 = vadd.f32 1e-05, %v56_v38 }
  0xa1   :  { %634 = vrsqrt.f32 %v61_v26  ;;  %v65_v47 = vadd.f32 1e-05, %v57_v44  ;;  %v66_v50 = vadd.f32 1e-05, %v58_v48  ;;  %v686_v44 = vmov 2  }
  0xa2   :  { %636 = vrsqrt.f32 %v59_v27 }
  0xa3   :  { %638 = vrsqrt.f32 %v60_v29 }
  0xa4   :  { %640 = vrsqrt.f32 %v62_v33 }
  0xa5   :  { %642 = vrsqrt.f32 %v63_v37 }
  0xa6   :  { %644 = vrsqrt.f32 %v64_v43 }
  0xa7   :  { %646 = vrsqrt.f32 %v65_v47 }
  0xa8   :  { %648 = vrsqrt.f32 %v66_v50 }
  0xab   :  { %v635_v40 = vpop.eup %634 }
  0xac   :  { %v637_v42 = vpop.eup %636  ;;  %87 = vrot.lane.b32.xlu0 %v635_v40, %s682_s29 }
  0xad   :  { %83 = vrot.lane.b32.xlu1 %v637_v42, %s682_s29  ;;  %v639_v46 = vpop.eup %638 }
  0xae   :  { %v641_v49 = vpop.eup %640 }
  0xaf   :  { %v643_v51 = vpop.eup %642 }
  0xb0   :  { %v645_v52 = vpop.eup %644 }
  0xb1   :  { %85 = vrot.lane.b32.xlu1 %v639_v46, %s682_s29  ;;  %v647_v53 = vpop.eup %646 }
  0xb2   :  { %v649_v54 = vpop.eup %648 }
  0xb5   :  { %89 = vrot.lane.b32.xlu1 %v641_v49, %s682_s29 }
  0xb9   :  { %91 = vrot.lane.b32.xlu1 %v643_v51, %s682_s29 }
  0xbd   :  { %93 = vrot.lane.b32.xlu1 %v645_v52, %s682_s29 }
  0xc1   :  { %95 = vrot.lane.b32.xlu1 %v647_v53, %s682_s29 }
  0xc5   :  { %97 = vrot.lane.b32.xlu1 %v649_v54, %s682_s29 }
 0x11e   :  { %v88_v57 = vpop.permute.xlu0 %87 }
 0x11f   :  { %v84_v55 = vpop.permute.xlu1 %83  ;;  %v109_v59 = vmul.f32 %v88_v57, %v729_v11 }
 0x120   :  { %v107_v56 = vmul.f32 %v84_v55, %v734_v12 }
 0x122   :  { %123 = vrot.lane.b32.xlu1 %v107_v56, %s683_s30 }
 0x123   :  { %v86_v58 = vpop.permute.xlu1 %85 }
 0x124   :  { %v108_v60 = vmul.f32 %v86_v58, %v739_v14 }
 0x126   :  { %127 = vrot.lane.b32.xlu1 %v109_v59, %s683_s30  ;;  %125 = vrot.lane.b32.xlu0 %v108_v60, %s683_s30 }
 0x127   :  { %v90_v61 = vpop.permute.xlu1 %89 }
 0x128   :  { %v110_v62 = vmul.f32 %v90_v61, %v753_v21  ;;  %v632_v61 = vld [vmem:[%s883_s2] sm:$0xff]  }
 0x129   :  { %601 = vmatprep.mubr.msk.bf16.mxu0 %vm335_vm1, %v632_v61 }
 0x12a   :  { %129 = vrot.lane.b32.xlu0 %v110_v62, %s683_s30 }
 0x12b   :  { %v92_v63 = vpop.permute.xlu1 %91 }
 0x12c   :  { %v111_v1 = vmul.f32 %v92_v63, %v760_v28 }
 0x12e   :  { %131 = vrot.lane.b32.xlu1 %v111_v1, %s683_s30 }
 0x12f   :  { %v94_v2 = vpop.permute.xlu1 %93 }
 0x130   :  { %v112_v3 = vmul.f32 %v94_v2, %v767_v32 }
 0x132   :  { %133 = vrot.lane.b32.xlu0 %v112_v3, %s683_s30 }
 0x133   :  { %v96_v7 = vpop.permute.xlu1 %95 }
 0x134   :  { %v113_v8 = vmul.f32 %v96_v7, %v774_v36 }
 0x136   :  { %135 = vrot.lane.b32.xlu1 %v113_v8, %s683_s30 }
 0x137   :  { %v98_v9 = vpop.permute.xlu1 %97 }
 0x138   :  { %v114_v10 = vmul.f32 %v98_v9, %v781_v41 }
 0x13a   :  { %137 = vrot.lane.b32.xlu0 %v114_v10, %s683_s30 }
 0x194   :  { %v124_v13 = vpop.permute.xlu1 %123 }
 0x195   :  { %v147_v17 = vmul.f32 %v124_v13, %v734_v12 }
 0x197   :  { %v213_v18 = vmul.f32 %v212_v16, %v147_v17 }
 0x198   :  { %v126_v19 = vpop.permute.xlu0 %125  ;;  %v128_v20 = vpop.permute.xlu1 %127 }
 0x199   :  { %v148_v22 = vmul.f32 %v126_v19, %v739_v14  ;;  %v149_v23 = vmul.f32 %v128_v20, %v729_v11  ;;  %229 = vrot.lane.b32.xlu1 %v213_v18, %s685_s4 }
 0x19b   :  { %v214_v24 = vmul.f32 %v212_v16, %v148_v22  ;;  %v215_v25 = vmul.f32 %v212_v16, %v149_v23 }
 0x19c   :  { %v130_v26 = vpop.permute.xlu0 %129 }
 0x19d   :  { %v150_v27 = vmul.f32 %v130_v26, %v753_v21  ;;  %231 = vrot.lane.b32.xlu0 %v214_v24, %s685_s4  ;;  %233 = vrot.lane.b32.xlu1 %v215_v25, %s685_s4 }
 0x19f   :  { %v216_v29 = vmul.f32 %v212_v16, %v150_v27 }
 0x1a0   :  { %v132_v6 = vpop.permute.xlu1 %131 }
 0x1a1   :  { %v151_v30 = vmul.f32 %v132_v6, %v760_v28  ;;  %235 = vrot.lane.b32.xlu0 %v216_v29, %s685_s4 }
 0x1a3   :  { %v217_v31 = vmul.f32 %v212_v16, %v151_v30 }
 0x1a4   :  { %v134_v33 = vpop.permute.xlu0 %133 }
 0x1a5   :  { %v152_v34 = vmul.f32 %v134_v33, %v767_v32  ;;  %237 = vrot.lane.b32.xlu1 %v217_v31, %s685_s4 }
 0x1a7   :  { %v218_v35 = vmul.f32 %v212_v16, %v152_v34 }
 0x1a8   :  { %v136_v37 = vpop.permute.xlu1 %135 }
 0x1a9   :  { %v153_v38 = vmul.f32 %v136_v37, %v774_v36  ;;  %239 = vrot.lane.b32.xlu0 %v218_v35, %s685_s4 }
 0x1ab   :  { %v219_v39 = vmul.f32 %v212_v16, %v153_v38 }
 0x1ac   :  { %v138_v40 = vpop.permute.xlu0 %137 }
 0x1ad   :  { %v154_v42 = vmul.f32 %v138_v40, %v781_v41  ;;  %241 = vrot.lane.b32.xlu1 %v219_v39, %s685_s4 }
 0x1af   :  { %v220_v43 = vmul.f32 %v212_v16, %v154_v42 }
 0x1b1   :  { %243 = vrot.lane.b32.xlu0 %v220_v43, %s685_s4  ;;  %163 = vperm.xlu1 %616, %v147_v17  }
 0x1b5   :  { %168 = vperm.xlu0 %617, %v148_v22   ;;  %178 = vperm.xlu1 %616, %v150_v27  }
 0x1b9   :  { %173 = vperm.xlu0 %617, %v149_v23   ;;  %183 = vperm.xlu1 %616, %v151_v30  }
 0x1bd   :  { %188 = vperm.xlu0 %617, %v152_v34   ;;  %618 = vset.pattern.permute.xlu1 %v686_v44 }
 0x1c1   :  { %619 = vset.pattern.permute.xlu0 %v686_v44 }
 0x20b   :  { %v230_v45 = vpop.permute.xlu1 %229 }
 0x20c   :  { %v253_v46 = vsub.f32 %v734_v12, %v230_v45 }
 0x20e   :  { %263 = vperm.xlu1 %618, %v253_v46  }
 0x20f   :  { %v232_v47 = vpop.permute.xlu0 %231  ;;  %v234_v48 = vpop.permute.xlu1 %233 }
 0x210   :  { %v254_v49 = vsub.f32 %v739_v14, %v232_v47  ;;  %v255_v50 = vsub.f32 %v729_v11, %v234_v48  ;;  %v633_v48 = vld [vmem:[%s883_s2 + $0x8] sm:$0xff]  }
 0x212   :  { %268 = vperm.xlu1 %618, %v254_v49   ;;  %273 = vperm.xlu0 %619, %v255_v50   ;;  %v392_v49 = vand.u32 127, %v47_v5  ;;  %v687_v50 = vmov 0.0  }
 0x213   :  { %v236_v51 = vpop.permute.xlu0 %235 }
 0x214   :  { %v256_v52 = vsub.f32 %v753_v21, %v236_v51  ;;  %vm393_vm2 = vcmp.lt.s32.totalorder %v392_v49, 8  ;;  %v689_v49 = vmov 4  }
 0x215   :  { %v586_v51 = vsel %vm393_vm2, 1.0, %v687_v50  ;;  %v690_v50 = vmov 5  }
 0x216   :  { %621 = vset.pattern.permute.xlu1 %v684_v4  ;;  %620 = vset.pattern.permute.xlu0 %v684_v4 }
 0x217   :  { %198 = vperm.xlu1 %621, %v154_v42   ;;  %193 = vperm.xlu0 %620, %v153_v38   ;;  %v238_v53 = vpop.permute.xlu1 %237 }
 0x218   :  { %v257_v54 = vsub.f32 %v760_v28, %v238_v53 }
 0x21b   :  { %622 = vset.pattern.permute.xlu1 %v686_v44  ;;  %623 = vset.pattern.permute.xlu0 %v686_v44  ;;  %v240_v55 = vpop.permute.xlu0 %239 }
 0x21c   :  { %278 = vperm.xlu1 %622, %v256_v52   ;;  %v258_v58 = vsub.f32 %v767_v32, %v240_v55  ;;  %v159_v32 = vrot.slane %v716_v0, %v741_v15 }
 0x21f   :  { %v242_v56 = vpop.permute.xlu1 %241 }
 0x220   :  { %v259_v57 = vsub.f32 %v774_v36, %v242_v56  ;;  %283 = vperm.xlu1 %622, %v257_v54  }
 0x222   :  { %293 = vperm.xlu0 %623, %v259_v57  }
 0x223   :  { %v244_v59 = vpop.permute.xlu0 %243 }
 0x224   :  { %288 = vperm.xlu1 %622, %v258_v58   ;;  %v260_v60 = vsub.f32 %v781_v41, %v244_v59 }
 0x228   :  { %298 = vperm.xlu1 %622, %v260_v60  }
 0x230   :  { %v164_v28 = vpop.permute.xlu1 %163 }
 0x231   :  { %v201_v3 = vmul.f32 %v164_v28, %v159_v32 }
 0x234   :  { %v179_v62 = vpop.permute.xlu1 %178  ;;  %v169_v63 = vpop.permute.xlu0 %168 }
 0x235   :  { %v202_v4 = vmul.f32 %v169_v63, %v159_v32  ;;  %v204_v20 = vmul.f32 %v179_v62, %v159_v32  ;;  %v688_v62 = vmov 3  }
 0x236   :  { %624 = vset.pattern.permute.xlu1 %v688_v62  ;;  %625 = vset.pattern.permute.xlu0 %v688_v62  ;;  %v691_v62 = vmov 6  }
 0x238   :  { %v184_v36 = vpop.permute.xlu1 %183  ;;  %v174_v1 = vpop.permute.xlu0 %173 }
 0x239   :  { %v203_v19 = vmul.f32 %v174_v1, %v159_v32  ;;  %v205_v27 = vmul.f32 %v184_v36, %v159_v32 }
 0x23c   :  { %v189_v9 = vpop.permute.xlu0 %188 }
 0x23d   :  { %v206_v6 = vmul.f32 %v189_v9, %v159_v32 }
 0x28d   :  { %v264_v2 = vpop.permute.xlu1 %263 }
 0x28e   :  { %v301_v41 = vadd.f32 %v264_v2, %v201_v3 }
 0x290   :  { %v309_v10 = vmax.f32 %v301_v41, 0.0 }
 0x291   :  { %v269_v7 = vpop.permute.xlu1 %268  ;;  %v274_v18 = vpop.permute.xlu0 %273 }
 0x292   :  { %v302_v8 = vadd.f32 %v269_v7, %v202_v4  ;;  %v303_v22 = vadd.f32 %v274_v18, %v203_v19 }
 0x294   :  { %v310_v13 = vmax.f32 %v302_v8, 0.0  ;;  %v311_v15 = vmax.f32 %v303_v22, 0.0 }
 0x296   :  { %v199_v16 = vpop.permute.xlu1 %198  ;;  %v321_v17 = vpack.c.bf16 %v310_v13, %v309_v10  ;;  %v194_v25 = vpop.permute.xlu0 %193 }
 0x297   :  { %v207_v34 = vmul.f32 %v194_v25, %v159_v32  ;;  %v208_v37 = vmul.f32 %v199_v16, %v159_v32 }
 0x298   :  { %593 = vmatprep.subr.bf16.mxu0 %v321_v17 }
 0x299   :  { %594 = vmatpush3.bf16.msra.mxu0 %v321_v17 }
 0x29b   :  { %v279_v23 = vpop.permute.xlu1 %278 }
 0x29c   :  { %v304_v0 = vadd.f32 %v279_v23, %v204_v20 }
 0x29e   :  { %v312_v24 = vmax.f32 %v304_v0, 0.0 }
 0x29f   :  { %v284_v26 = vpop.permute.xlu1 %283 }
 0x2a0   :  { %v322_v29 = vpack.c.bf16 %v312_v24, %v311_v15  ;;  %v305_v30 = vadd.f32 %v284_v26, %v205_v27 }
 0x2a1   :  { %v294_v31 = vpop.permute.xlu0 %293 }
 0x2a2   :  { %595 = vmatprep.subr.bf16.mxu0 %v322_v29  ;;  %v313_v38 = vmax.f32 %v305_v30, 0.0  ;;  %v307_v39 = vadd.f32 %v294_v31, %v207_v34 }
 0x2a3   :  { %596 = vmatpush3.bf16.msra.mxu0 %v322_v29  ;;  %v289_v33 = vpop.permute.xlu1 %288 }
 0x2a4   :  { %v306_v35 = vadd.f32 %v289_v33, %v206_v6  ;;  %v315_v45 = vmax.f32 %v307_v39, 0.0 }
 0x2a6   :  { %v314_v40 = vmax.f32 %v306_v35, 0.0 }
 0x2a7   :  { %v299_v42 = vpop.permute.xlu1 %298 }
 0x2a8   :  { %v323_v43 = vpack.c.bf16 %v314_v40, %v313_v38  ;;  %v308_v44 = vadd.f32 %v299_v42, %v208_v37 }
 0x2aa   :  { %v316_v46 = vmax.f32 %v308_v44, 0.0  ;;  %597 = vmatprep.subr.bf16.mxu0 %v323_v43 }
 0x2ab   :  { %598 = vmatpush3.bf16.msra.mxu0 %v323_v43 }
 0x2ac   :  { %v324_v47 = vpack.c.bf16 %v316_v46, %v315_v45 }
 0x2ae   :  { %599 = vmatprep.subr.bf16.mxu0 %v324_v47 }
 0x2af   :  { %600 = vmatpush3.bf16.msra.mxu0 %v324_v47 }
 0x2b2   :  { %602 = vmatmul.mubr.msk.bf16.vlgmr.msra.gmra.mrb[0].mxu0 %vm335_vm1, %v633_v48 }
 0x385   :  { %v830_v52 = vpop.f32.mrb[0].mxu0 }
 0x386   :  { %v832_v53 = vpop.f32.mrb[1].mxu0  ;;  %v398_v54 = vmul.f32 %v830_v52, %v586_v51 }
 0x387   :  { %v835_v55 = vpop.f32.mrb[2].mxu0  ;;  %v396_v56 = vmul.f32 %v586_v51, %v832_v53 }
 0x388   :  { %404 = vadd.xlane.f32.xlu0 %v398_v54  ;;  %v838_v57 = vpop.f32.mrb[3].mxu0  ;;  %v399_v5 = vmul.f32 %v835_v55, %v586_v51  ;;  %v414_v61 = vmul.f32 %v830_v52, %v398_v54 }
 0x389   :  { %400 = vadd.xlane.f32.xlu1 %v396_v56  ;;  %v397_v58 = vmul.f32 %v586_v51, %v838_v57  ;;  %v412_v60 = vmul.f32 %v396_v56, %v832_v53 }
 0x38a   :  { %v415_v28 = vmul.f32 %v835_v55, %v399_v5 }
 0x38b   :  { %v413_v59 = vmul.f32 %v397_v58, %v838_v57 }
 0x38c   :  { %402 = vadd.xlane.f32.xlu0 %v397_v58 }
 0x38d   :  { %406 = vadd.xlane.f32.xlu1 %v399_v5 }
 0x390   :  { %418 = vadd.xlane.f32.xlu0 %v413_v59 }
 0x391   :  { %416 = vadd.xlane.f32.xlu1 %v412_v60 }
 0x394   :  { %420 = vadd.xlane.f32.xlu0 %v414_v61 }
 0x395   :  { %422 = vadd.xlane.f32.xlu1 %v415_v28  ;;  %v25_v28 = vld [vmem:[%s882_s1] sm:$0x1]  ;;  %s692_s1 = smov [#allocation2]  }
 0x396   :  { %s574_s10 = sshll.u32 %s692_s1, 4  ;;  %s575_s10 = int_to_ptr.vmem [resolvable:$true] %s574_s10 }
 0x397   :  { %s658_s11 = scalar_lea.vmem %s575_s10, 16  ;;  %s662_s12 = scalar_lea.vmem %s575_s10, 32 }
 0x398   :  { %p659_p0 = scmp.ne.s32.totalorder %s575_s10, %s658_s11  ;;  %p663_p1 = scmp.lt.s32.totalorder %s575_s10, %s575_s10 }
 0x399   :  { %p664_p2 = scmp.lt.s32.totalorder %s662_s12, %s658_s11 }
 0x39b   :  { %p665_p3 = por %p664_p2, %p663_p1 }
 0x39d   :  { %p666_p4 = pnand %p665_p3, %p659_p0 }
 0x415   :  { %v405_v63 = vpop.xlane.xlu0 %404 }
 0x416   :  { %v401_v36 = vpop.xlane.xlu1 %400  ;;  %v410_v41 = vmul.f32 0.125, %v405_v63 }
 0x417   :  { %v408_v3 = vmul.f32 0.125, %v401_v36 }
 0x418   :  { %v430_v20 = vmul.f32 %v410_v41, %v410_v41 }
 0x419   :  { %v403_v32 = vpop.xlane.xlu0 %402  ;;  %v428_v10 = vmul.f32 %v408_v3, %v408_v3 }
 0x41a   :  { %v409_v1 = vmul.f32 0.125, %v403_v32  ;;  %v407_v2 = vpop.xlane.xlu1 %406 }
 0x41b   :  { %v411_v13 = vmul.f32 0.125, %v407_v2 }
 0x41c   :  { %v429_v7 = vmul.f32 %v409_v1, %v409_v1 }
 0x41d   :  { %v419_v4 = vpop.xlane.xlu0 %418  ;;  %v431_v15 = vmul.f32 %v411_v13, %v411_v13 }
 0x41e   :  { %v425_v8 = vmul.f32 0.125, %v419_v4  ;;  %v417_v9 = vpop.xlane.xlu1 %416 }
 0x41f   :  { %v424_v16 = vmul.f32 0.125, %v417_v9 }
 0x420   :  { %v433_v17 = vsub.f32 %v425_v8, %v429_v7 }
 0x421   :  { %v432_v18 = vsub.f32 %v424_v16, %v428_v10  ;;  %v421_v19 = vpop.xlane.xlu0 %420 }
 0x422   :  { %v437_v22 = vmax.f32 %v433_v17, 0.0  ;;  %v426_v23 = vmul.f32 0.125, %v421_v19  ;;  %v423_v0 = vpop.xlane.xlu1 %422 }
 0x423   :  { %v436_v24 = vmax.f32 %v432_v18, 0.0  ;;  %v427_v25 = vmul.f32 0.125, %v423_v0 }
 0x424   :  { %v441_v26 = vadd.f32 1e-05, %v437_v22  ;;  %v434_v27 = vsub.f32 %v426_v23, %v430_v20 }
 0x425   :  { %v440_v29 = vadd.f32 1e-05, %v436_v24  ;;  %v435_v6 = vsub.f32 %v427_v25, %v431_v15 }
 0x426   :  { %650 = vrsqrt.f32 %v441_v26  ;;  %v438_v30 = vmax.f32 %v434_v27, 0.0 }
 0x427   :  { %652 = vrsqrt.f32 %v440_v29  ;;  %v439_v31 = vmax.f32 %v435_v6, 0.0 }
 0x428   :  { %v442_v33 = vadd.f32 1e-05, %v438_v30 }
 0x429   :  { %v443_v34 = vadd.f32 1e-05, %v439_v31 }
 0x42a   :  { %654 = vrsqrt.f32 %v442_v33 }
 0x42b   :  { %656 = vrsqrt.f32 %v443_v34 }
 0x430   :  { %v651_v35 = vpop.eup %650 }
 0x431   :  { %v653_v37 = vpop.eup %652  ;;  %v449_v38 = vmul.f32 %v651_v35, %v739_v14 }
 0x432   :  { %v448_v39 = vmul.f32 %v653_v37, %v734_v12 }
 0x433   :  { %v477_v40 = vmul.f32 %v449_v38, %v409_v1 }
 0x434   :  { %v655_v42 = vpop.eup %654  ;;  %v476_v43 = vmul.f32 %v448_v39, %v408_v3 }
 0x435   :  { %v657_v44 = vpop.eup %656  ;;  %486 = vrot.lane.b32.xlu1 %v477_v40, %s682_s29  ;;  %v450_v45 = vmul.f32 %v655_v42, %v729_v11 }
 0x436   :  { %484 = vrot.lane.b32.xlu0 %v476_v43, %s682_s29  ;;  %v451_v46 = vmul.f32 %v657_v44, %v753_v21 }
 0x437   :  { %v478_v47 = vmul.f32 %v450_v45, %v410_v41 }
 0x438   :  { %v479_v48 = vmul.f32 %v451_v46, %v411_v13 }
 0x439   :  { %488 = vrot.lane.b32.xlu1 %v478_v47, %s682_s29 }
 0x43a   :  { %490 = vrot.lane.b32.xlu0 %v479_v48, %s682_s29 }
 0x43d   :  { %454 = vperm.xlu1 %624, %v448_v39  }
 0x43e   :  { %459 = vperm.xlu0 %625, %v449_v38  }
 0x441   :  { %464 = vperm.xlu1 %624, %v450_v45  }
 0x442   :  { %628 = vset.pattern.permute.xlu0 %v689_v49 }
 0x445   :  { %469 = vperm.xlu1 %624, %v451_v46  }
 0x449   :  { %626 = vset.pattern.permute.xlu1 %v690_v50 }
 0x44a   :  { %530 = vperm.xlu1 %626, %v734_v12  }
 0x44e   :  { %627 = vset.pattern.permute.xlu1 %v689_v49 }
 0x4a7   :  { %v487_v51 = vpop.permute.xlu1 %486 }
 0x4a8   :  { %v485_v54 = vpop.permute.xlu0 %484  ;;  %v497_v61 = vsub.f32 %v739_v14, %v487_v51 }
 0x4a9   :  { %v496_v60 = vsub.f32 %v734_v12, %v485_v54 }
 0x4ab   :  { %v489_v56 = vpop.permute.xlu1 %488 }
 0x4ac   :  { %v498_v58 = vsub.f32 %v729_v11, %v489_v56  ;;  %v491_v5 = vpop.permute.xlu0 %490 }
 0x4ad   :  { %v499_v59 = vsub.f32 %v753_v21, %v491_v5 }
 0x4ae   :  { %512 = vperm.xlu1 %627, %v498_v58  }
 0x4af   :  { %517 = vperm.xlu0 %628, %v499_v59  }
 0x4b2   :  { %502 = vperm.xlu1 %627, %v496_v60  }
 0x4b3   :  { %507 = vperm.xlu0 %628, %v497_v61  }
 0x4b6   :  { %630 = vset.pattern.permute.xlu1 %v690_v50 }
 0x4b7   :  { %540 = vperm.xlu1 %630, %v729_v11   ;;  %629 = vset.pattern.permute.xlu0 %v690_v50 }
 0x4b8   :  { %535 = vperm.xlu0 %629, %v739_v14  }
 0x4bb   :  { %545 = vperm.xlu1 %630, %v753_v21  }
 0x4bc   :  { %631 = vset.pattern.permute.xlu0 %v691_v62  ;;  %v455_v12 = vpop.permute.xlu1 %454 }
 0x4bd   :  { %563 = vperm.xlu0 %631, %v25_v28   ;;  %v460_v1 = vpop.permute.xlu0 %459  ;;  %v472_v11 = vmul.f32 %v455_v12, %v832_v53 }
 0x4be   :  { %v473_v14 = vmul.f32 %v460_v1, %v838_v57 }
 0x4c0   :  { %v465_v63 = vpop.permute.xlu1 %464 }
 0x4c1   :  { %v474_v41 = vmul.f32 %v830_v52, %v465_v63 }
 0x4c4   :  { %v470_v36 = vpop.permute.xlu1 %469 }
 0x4c5   :  { %v475_v21 = vmul.f32 %v835_v55, %v470_v36 }
 0x4c9   :  { %v531_v32 = vpop.permute.xlu1 %530 }
 0x52d   :  { %v513_v2 = vpop.permute.xlu1 %512 }
 0x52e   :  { %v518_v3 = vpop.permute.xlu0 %517  ;;  %v522_v10 = vadd.f32 %v513_v2, %v474_v41 }
 0x52f   :  { %v523_v16 = vadd.f32 %v518_v3, %v475_v21 }
 0x530   :  { %v526_v20 = vmax.f32 %v522_v10, 0.0 }
 0x531   :  { %v503_v4 = vpop.permute.xlu1 %502  ;;  %v527_v53 = vmax.f32 %v523_v16, 0.0 }
 0x532   :  { %v520_v7 = vadd.f32 %v503_v4, %v472_v11  ;;  %v508_v8 = vpop.permute.xlu0 %507 }
 0x533   :  { %v521_v9 = vadd.f32 %v508_v8, %v473_v14 }
 0x534   :  { %v524_v13 = vmax.f32 %v520_v7, 0.0 }
 0x535   :  { %v525_v17 = vmax.f32 %v521_v9, 0.0 }
 0x536   :  { %v541_v18 = vpop.permute.xlu1 %540  ;;  %v548_v22 = vmul.f32 %v531_v32, %v524_v13 }
 0x537   :  { %v536_v19 = vpop.permute.xlu0 %535  ;;  %v550_v0 = vmul.f32 %v541_v18, %v526_v20 }
 0x538   :  { %v549_v23 = vmul.f32 %v536_v19, %v525_v17 }
 0x53a   :  { %v552_v57 = vadd.f32 %v549_v23, %v548_v22  ;;  %v546_v15 = vpop.permute.xlu1 %545 }
 0x53b   :  { %v551_v24 = vmul.f32 %v546_v15, %v527_v53 }
 0x53c   :  { %v553_v52 = vadd.f32 %v552_v57, %v550_v0  ;;  %v564_v30 = vpop.permute.xlu0 %563 }
 0x53e   :  { %v554_v25 = vadd.f32 %v553_v52, %v551_v24 }
 0x540   :  { %v555_v26 = vrot.slane %v554_v25, 4 }
 0x542   :  { %v556_v27 = vadd.f32 %v555_v26, %v554_v25 }
 0x544   :  { %v557_v55 = vrot.slane %v556_v27, 2 }
 0x546   :  { %v558_v29 = vadd.f32 %v557_v55, %v556_v27 }
 0x548   :  { %v559_v6 = vrot.slane %v558_v29, 1 }
 0x54a   :  { %v560_v31 = vadd.f32 %v559_v6, %v558_v29 }
 0x54c   :  { %v566_v33 = vadd.f32 %v564_v30, %v560_v31 }
 0x54e   :  { %567 = vst [vmem:[#allocation2] sm:$0x1] %v566_v33 }
 0x54f   :  { %669 = shalt.err (!%p666_p4)
}
 0x550   :  { %s670_s14 = scalar_lea.hbm %s884_s3, 16 }
 0x551   :  { %p671_p5 = scmp.ne.s32.totalorder %s884_s3, %s670_s14  ;;  %p674_p6 = scmp.lt.u32.totalorder %s670_s14, %s884_s3 }
 0x553   :  { %p676_p7 = pnand %p674_p6, %p671_p5 }
 0x555   :  { %679 = shalt.err (!%p676_p7)
}
 0x556   :  { %577 = dma.vmem_to_hbm [thread:$0]  %s575_s10, 16, %s884_s3, [#allocation3]  }
 0x557   :  { %680 = dma.done.wait [#allocation3], 16  }
 0x558   :  { %681 = vsyncadd [#allocation3], 4294967280 }
 0x559   :  { %581 = vsyncpa [#allocation3], 1 }

</bundles_post_ra>
